<compile_context>
chip_gen: v6e
topology: v6e:2x2x1
jax: 0.10.0
libtpu: 0.0.40
codegen_flags: <defaults>
</compile_context>

<pallas_src>
import functools
import math

import jax
import jax.numpy as jnp
from jax.experimental import pallas as pl
from jax.experimental.pallas import tpu as pltpu

_HIGHEST = jax.lax.Precision.HIGHEST


# ----------------------------------------------------------------------------
# Pallas kernel: TB timesteps of the GRU recurrence per grid step.
# Grid = (batch_chunks [parallel], time_blocks [arbitrary]).
# ----------------------------------------------------------------------------
def _gru_recurrent_kernel(gi_ref, whh_ref, bhhn_ref, out_ref, h_scr, *, tb, hp, unroll):
    """gi_ref  : (TB, BB, 3*Hp) f32  precomputed input gates (biases folded in)
       whh_ref : (Hp, 3*Hp)    bf16  hidden->gates weight, VMEM resident
       bhhn_ref: (1, Hp)       f32   n-gate hidden bias (must stay inside r*(...))
       out_ref : (TB, BB, Hp)  f32   hidden states for these TB timesteps
       h_scr   : (BB, Hp)      f32   hidden state carried across time blocks
    """
    @pl.when(pl.program_id(1) == 0)     # first time block of this batch chunk
    def _():
        h_scr[...] = jnp.zeros_like(h_scr)

    bb = h_scr.shape[0]
    # Hoisted once per grid step (JAX does not CSE broadcast_in_dim inside loops).
    bhh_n = jnp.broadcast_to(bhhn_ref[...], (bb, hp))

    def one_step(t, h):
        gi = gi_ref[t]                                                # (BB, 3*Hp) f32
        # Re-read the VMEM-resident weight here (instead of hoisting it live across
        # the whole loop) so Mosaic schedules loads next to the matmul, no spills.
        gh = jnp.dot(h.astype(jnp.bfloat16), whh_ref[...],
                     preferred_element_type=jnp.float32)              # bf16 MXU, f32 acc
        rz = jax.nn.sigmoid(gi[:, :2 * hp] + gh[:, :2 * hp])          # fused r|z, lane aligned
        r, z = rz[:, :hp], rz[:, hp:]
        n = jnp.tanh(gi[:, 2 * hp:] + r * (gh[:, 2 * hp:] + bhh_n))
        h_new = (1.0 - z) * n + z * h                                 # torch.nn.GRUCell update
        out_ref[t] = h_new
        return h_new

    def outer(i, h):                     # partial unroll: bounded vreg live ranges
        base = i * unroll
        for j in range(unroll):
            h = one_step(base + j, h)
        return h

    h_scr[...] = jax.lax.fori_loop(0, tb // unroll, outer, h_scr[...])


# ----------------------------------------------------------------------------
# One-time parameter packing (per-gate, lane-padded, bf16 weights).
# ----------------------------------------------------------------------------
def pack_gru_layer_params(w_ih, w_hh, b_ih, b_hh, in_width):
    """Torch GRUCell params -> kernel layout.  `in_width >= I` is the (possibly
    lane-padded) feature width of this layer's input; extra W_ih rows are zero."""
    H3, I = w_ih.shape
    H = H3 // 3
    Hp = max(128, ((H + 127) // 128) * 128)

    wih_g = jnp.pad(w_ih.reshape(3, H, I), ((0, 0), (0, Hp - H), (0, in_width - I)))
    wih_pad = jnp.transpose(wih_g, (2, 0, 1)).reshape(in_width, 3 * Hp).astype(jnp.bfloat16)
    whh_g = jnp.pad(w_hh.reshape(3, H, H), ((0, 0), (0, Hp - H), (0, Hp - H)))
    whh_pad = jnp.transpose(whh_g, (2, 0, 1)).reshape(Hp, 3 * Hp).astype(jnp.bfloat16)

    bih3 = jnp.pad(b_ih.reshape(3, H), ((0, 0), (0, Hp - H)))
    bhh3 = jnp.pad(b_hh.reshape(3, H), ((0, 0), (0, Hp - H)))
    # Fold b_ih (all gates) and b_hh (r/z only) into the input projection; the
    # n-gate hidden bias must stay inside r * (W_hn h + b_hn).
    bias_in = jnp.concatenate(
        [bih3[0] + bhh3[0], bih3[1] + bhh3[1], bih3[2]]).reshape(1, 1, 3 * Hp)
    bhh_n = bhh3[2].reshape(1, Hp)
    return {"wih": wih_pad, "whh": whh_pad, "bias_in": bias_in, "bhh_n": bhh_n,
            "H": H, "Hp": Hp, "in_width": in_width}


def pack_multilayer_gru_params(params, input_size):
    packed, in_width = [], input_size
    for (w_ih, w_hh, b_ih, b_hh) in params:
        p = pack_gru_layer_params(w_ih, w_hh, b_ih, b_hh, in_width)
        packed.append(p)
        in_width = p["Hp"]          # next layer consumes the lane-padded sequence
    return packed


# ----------------------------------------------------------------------------
# One GRU layer over the full sequence.  Input/output are TIME-MAJOR, the output
# stays lane-padded at Hp (padded lanes are provably zero).
# ----------------------------------------------------------------------------
def gru_layer_pallas_tm(x_tbF, packed, *, time_block=16, unroll=4):
    T, B, F = x_tbF.shape
    Hp = packed["Hp"]

    # Hoisted input projection: one big bf16 matmul (f32 accumulate) over all T*B rows.
    gi_all = (jnp.einsum("tbi,ig->tbg", x_tbF.astype(jnp.bfloat16), packed["wih"],
                         preferred_element_type=jnp.float32)
              + packed["bias_in"])

    # Block the time axis; pad time/batch to tile boundaries.
    TB = max(1, min(time_block, T))
    U = math.gcd(TB, max(1, unroll))
    T_pad = -(-T // TB) * TB
    B_pad = -(-B // 8) * 8
    if (T_pad, B_pad) != (T, B):
        gi_all = jnp.pad(gi_all, ((0, T_pad - T), (0, B_pad - B), (0, 0)))
    # Two batch chunks (one per TensorCore on v7x) once the batch spans >= 2
    # sublane tiles; otherwise a single chunk.
    BB = B_pad // 2 if (B_pad >= 16 and B_pad % 16 == 0) else B_pad

    # VMEM budget: double-buffered gi/out blocks + single-buffered residents.
    vmem_need = (4 * (2 * TB * BB * 3 * Hp + 2 * TB * BB * Hp + BB * Hp + Hp)
                 + 2 * Hp * 3 * Hp)
    try:
        vmem_cap = pltpu.get_tpu_info().vmem_capacity_bytes   # 128 MiB v5e/v6e, 64 MiB v7x
    except Exception:
        vmem_cap = 64 * 1024 * 1024
    vmem_limit = int(min(max(2 * vmem_need, 32 * 1024 * 1024), (vmem_cap * 3) // 4))
    vmem_limit = max(vmem_limit, vmem_need + (4 << 20))

    out_tbHp = pl.pallas_call(
        functools.partial(_gru_recurrent_kernel, tb=TB, hp=Hp, unroll=U),
        out_shape=jax.ShapeDtypeStruct((T_pad, B_pad, Hp), jnp.float32),
        grid=(B_pad // BB, T_pad // TB),
        in_specs=[
            pl.BlockSpec((TB, BB, 3 * Hp), lambda b, t: (t, b, 0)),
            # Grid-invariant operands: whole-array VMEM residents (single-buffered).
            pl.BlockSpec(memory_space=pltpu.MemorySpace.VMEM),
            pl.BlockSpec(memory_space=pltpu.MemorySpace.VMEM),
        ],
        out_specs=pl.BlockSpec((TB, BB, Hp), lambda b, t: (t, b, 0)),
        scratch_shapes=[pltpu.VMEM((BB, Hp), jnp.float32)],
        compiler_params=pltpu.CompilerParams(
            dimension_semantics=("parallel", "arbitrary"),  # batch chunks || , time carries h
            vmem_limit_bytes=vmem_limit,
        ),
    )(gi_all, packed["whh"], packed["bhh_n"])

    return out_tbHp[:T, :B, :]      # keep Hp lanes; only strip time/batch padding


# ----------------------------------------------------------------------------
# MultiLayerBase.forward (mode='GRU') — batch-first in/out like the PyTorch module.
# ----------------------------------------------------------------------------
def multilayer_base_forward(inputs, packed_params, return_sequences=True):
    """inputs: [B, T, input_size]; packed_params from pack_multilayer_gru_params."""
    prev = jnp.transpose(inputs, (1, 0, 2))        # time-major once, kept across layers
    seqs = []                                      # (lane-padded seq, true H) per layer
    for p in packed_params:
        prev = gru_layer_pallas_tm(prev, p)
        seqs.append((prev, p["H"]))
    last_seq, last_H = seqs[-1]
    if return_sequences:
        last_bt = jnp.transpose(last_seq[:, :, :last_H], (1, 0, 2))        # [B,T,H_last]
        all_bt = jnp.transpose(
            jnp.concatenate([s[:, :, :h] for (s, h) in seqs], axis=-1), (1, 0, 2))
        return last_bt, all_bt
    # TODO(synk): 'LSTM' mode (multilayer_lstm with a carried cell state) not implemented.
    return last_seq[-1, :, :last_H]                                        # [B, H_last]


# Pure-JAX f32 reference (torch.nn.GRUCell semantics) for the correctness check.
def _gru_layer_ref(x_btI, w_ih, w_hh, b_ih, b_hh):
    B, T, _ = x_btI.shape
    H = w_hh.shape[1]
    h = jnp.zeros((B, H), jnp.float32)
    outs = []
    for t in range(T):
        x = x_btI[:, t, :]
        gi = jnp.dot(x, w_ih.T, precision=_HIGHEST) + b_ih
        gh = jnp.dot(h, w_hh.T, precision=_HIGHEST) + b_hh
        i_r, i_z, i_n = gi[:, :H], gi[:, H:2 * H], gi[:, 2 * H:]
        h_r, h_z, h_n = gh[:, :H], gh[:, H:2 * H], gh[:, 2 * H:]
        r = jax.nn.sigmoid(i_r + h_r)
        z = jax.nn.sigmoid(i_z + h_z)
        n = jnp.tanh(i_n + r * h_n)
        h = (1.0 - z) * n + z * h
        outs.append(h)
    return jnp.stack(outs, axis=1)


if __name__ == "__main__":
    # Small shapes consistent with the module's forward: [B, T, input_size].
    B, T, INPUT_SIZE = 16, 32, 32
    HIDDEN_SIZES = [32, 64]          # two stacked GRU cells with different widths

    key = jax.random.PRNGKey(0)
    k_x, key = jax.random.split(key)
    x = jax.random.normal(k_x, (B, T, INPUT_SIZE), dtype=jnp.float32)

    # Deterministic params (torch GRUCell shapes: [3H, in], [3H, H], [3H], [3H]).
    params = []
    in_size = INPUT_SIZE
    for H in HIDDEN_SIZES:
        k1, k2, k3, k4, key = jax.random.split(key, 5)
        bound = 1.0 / jnp.sqrt(H)
        w_ih = jax.random.uniform(k1, (3 * H, in_size), jnp.float32, -bound, bound)
        w_hh = jax.random.uniform(k2, (3 * H, H), jnp.float32, -bound, bound)
        b_ih = jax.random.uniform(k3, (3 * H,), jnp.float32, -bound, bound)
        b_hh = jax.random.uniform(k4, (3 * H,), jnp.float32, -bound, bound)
        params.append((w_ih, w_hh, b_ih, b_hh))
        in_size = H

    # Pack weights ONCE outside the jitted forward (pads/transposes/bf16 casts).
    packed = pack_multilayer_gru_params(params, INPUT_SIZE)

    forward = jax.jit(functools.partial(
        multilayer_base_forward, packed_params=packed, return_sequences=True))
    last_seq, all_seq = forward(x)
    jax.block_until_ready((last_seq, all_seq))

    # Correctness check against the pure-JAX f32 reference (kernel uses bf16
    # matmuls with f32 accumulate, so the tolerance is loosened accordingly).
    ref_prev = x
    ref_all = []
    for (w_ih, w_hh, b_ih, b_hh) in params:
        ref_prev = _gru_layer_ref(ref_prev, w_ih, w_hh, b_ih, b_hh)
        ref_all.append(ref_prev)
    ref_last = ref_prev
    ref_cat = jnp.concatenate(ref_all, axis=2)

    assert last_seq.shape == (B, T, HIDDEN_SIZES[-1])
    assert all_seq.shape == (B, T, sum(HIDDEN_SIZES))
    assert jnp.allclose(last_seq, ref_last, atol=5e-2, rtol=5e-2)
    assert jnp.allclose(all_seq, ref_cat, atol=5e-2, rtol=5e-2)

    print("KERNEL_OK")
</pallas_src>

<mosaic_0001>
module attributes {stable_mosaic.version = 11 : i64} {
  func.func @_gru_recurrent_kernel(%arg0: i32, %arg1: i32, %arg2: memref<16x8x384xf32, #tpu.memory_space<vmem>>, %arg3: memref<128x384xbf16, #tpu.memory_space<vmem>>, %arg4: memref<1x128xf32, #tpu.memory_space<vmem>>, %arg5: memref<16x8x128xf32, #tpu.memory_space<vmem>>, %arg6: memref<8x128xf32, #tpu.memory_space<vmem>>) attributes {dimension_semantics = [#tpu.dimension_semantics<parallel>, #tpu.dimension_semantics<arbitrary>], iteration_bounds = array<i64: 2, 2>, scalar_prefetch = 0 : i64, scratch_operands = 1 : i64, tpu.core_type = #tpu.core_type<tc>, window_params = [{transform_indices = @transform_0, window_bounds = array<i64: 16, 8, 384>}, {pipeline_mode = #tpu.pipeline_mode<synchronous>, transform_indices = @transform_1, window_bounds = array<i64: 128, 384>}, {pipeline_mode = #tpu.pipeline_mode<synchronous>, transform_indices = @transform_2, window_bounds = array<i64: 1, 128>}, {transform_indices = @transform_3, window_bounds = array<i64: 16, 8, 128>}]} {
    %c0_i32 = arith.constant 0 : i32
    %0 = arith.cmpi eq, %arg1, %c0_i32 : i32
    %1 = arith.extui %0 : i1 to i32
    %c0_i32_0 = arith.constant 0 : i32
    %2 = arith.cmpi ne, %1, %c0_i32_0 : i32
    scf.if %2 {
      %cst = arith.constant 0.000000e+00 : f32
      %10 = vector.broadcast %cst : f32 to vector<8x128xf32>
      %c0_8 = arith.constant 0 : index
      %c0_9 = arith.constant 0 : index
      %11 = vector.load %arg6[%c0_8, %c0_9] : memref<8x128xf32, #tpu.memory_space<vmem>>, vector<8x128xf32>
      tpu.vector_store %arg6[%c0_8, %c0_9], %10 {strides = array<i32>} : memref<8x128xf32, #tpu.memory_space<vmem>>, vector<8x128xf32>,
    } else {
    }
    %c0 = arith.constant 0 : index
    %c0_1 = arith.constant 0 : index
    %3 = vector.load %arg4[%c0, %c0_1] : memref<1x128xf32, #tpu.memory_space<vmem>>, vector<1x128xf32>
    %4 = vector.shape_cast %3 : vector<1x128xf32> to vector<1x128xf32>
    %5 = vector.broadcast %4 : vector<1x128xf32> to vector<8x128xf32>
    %c0_2 = arith.constant 0 : index
    %c0_3 = arith.constant 0 : index
    %6 = vector.load %arg6[%c0_2, %c0_3] : memref<8x128xf32, #tpu.memory_space<vmem>>, vector<8x128xf32>
    %c0_i32_4 = arith.constant 0 : i32
    %c4_i32 = arith.constant 4 : i32
    %7 = arith.addi %c0_i32_4, %c4_i32 : i32
    %c1_i32 = arith.constant 1 : i32
    %8 = scf.for %arg7 = %c0_i32_4 to %7 step %c1_i32 iter_args(%arg8 = %6) -> (vector<8x128xf32>)  : i32 {
      %c4_i32_8 = arith.constant 4 : i32
      %10 = arith.muli %arg7, %c4_i32_8 : i32
      %c0_i32_9 = arith.constant 0 : i32
      %11 = arith.addi %10, %c0_i32_9 : i32
      %12 = arith.index_cast %11 : i32 to index
      %c0_10 = arith.constant 0 : index
      %c0_11 = arith.constant 0 : index
      %13 = vector.load %arg2[%12, %c0_10, %c0_11] : memref<16x8x384xf32, #tpu.memory_space<vmem>>, vector<1x8x384xf32>
      %14 = vector.shape_cast %13 : vector<1x8x384xf32> to vector<8x384xf32>
      %15 = arith.truncf %arg8 : vector<8x128xf32> to vector<8x128xbf16>
      %c0_12 = arith.constant 0 : index
      %c0_13 = arith.constant 0 : index
      %16 = vector.load %arg3[%c0_12, %c0_13] : memref<128x384xbf16, #tpu.memory_space<vmem>>, vector<128x384xbf16>
      %cst = arith.constant dense<0.000000e+00> : vector<8x384xf32>
      %17 = tpu.matmul %15, %16, %cst {dimension_numbers = #tpu.dot_dimension_numbers<[1], [0], [0], [1], [0, 0, 1, 1], [], []>} : vector<8x128xbf16>, vector<128x384xbf16>, vector<8x384xf32> -> vector<8x384xf32>
      %18 = vector.extract_strided_slice %14 {offsets = [0, 0], sizes = [8, 256], strides = [1, 1]} : vector<8x384xf32> to vector<8x256xf32>
      %19 = vector.extract_strided_slice %17 {offsets = [0, 0], sizes = [8, 256], strides = [1, 1]} : vector<8x384xf32> to vector<8x256xf32>
      %20 = arith.addf %18, %19 : vector<8x256xf32>
      %21 = arith.negf %20 : vector<8x256xf32>
      %22 = math.exp %21 : vector<8x256xf32>
      %cst_14 = arith.constant 1.000000e+00 : f32
      %23 = vector.broadcast %cst_14 : f32 to vector<8x256xf32>
      %24 = arith.addf %23, %22 : vector<8x256xf32>
      %25 = arith.divf %23, %24 : vector<8x256xf32>
      %26 = vector.extract_strided_slice %25 {offsets = [0, 0], sizes = [8, 128], strides = [1, 1]} : vector<8x256xf32> to vector<8x128xf32>
      %27 = vector.extract_strided_slice %25 {offsets = [0, 128], sizes = [8, 128], strides = [1, 1]} : vector<8x256xf32> to vector<8x128xf32>
      %28 = vector.extract_strided_slice %14 {offsets = [0, 256], sizes = [8, 128], strides = [1, 1]} : vector<8x384xf32> to vector<8x128xf32>
      %29 = vector.extract_strided_slice %17 {offsets = [0, 256], sizes = [8, 128], strides = [1, 1]} : vector<8x384xf32> to vector<8x128xf32>
      %30 = arith.addf %29, %5 : vector<8x128xf32>
      %31 = arith.mulf %26, %30 : vector<8x128xf32>
      %32 = arith.addf %28, %31 : vector<8x128xf32>
      %33 = math.tanh %32 : vector<8x128xf32>
      %cst_15 = arith.constant 1.000000e+00 : f32
      %34 = vector.broadcast %cst_15 : f32 to vector<8x128xf32>
      %35 = arith.subf %34, %27 : vector<8x128xf32>
      %36 = arith.mulf %35, %33 : vector<8x128xf32>
      %37 = arith.mulf %27, %arg8 : vector<8x128xf32>
      %38 = arith.addf %36, %37 : vector<8x128xf32>
      %39 = arith.index_cast %11 : i32 to index
      %c0_16 = arith.constant 0 : index
      %c0_17 = arith.constant 0 : index
      %40 = vector.load %arg5[%39, %c0_16, %c0_17] : memref<16x8x128xf32, #tpu.memory_space<vmem>>, vector<1x8x128xf32>
      %41 = vector.shape_cast %40 : vector<1x8x128xf32> to vector<8x128xf32>
      %42 = vector.shape_cast %38 : vector<8x128xf32> to vector<1x8x128xf32>
      tpu.vector_store %arg5[%39, %c0_16, %c0_17], %42 {strides = array<i32>} : memref<16x8x128xf32, #tpu.memory_space<vmem>>, vector<1x8x128xf32>,
      %c1_i32_18 = arith.constant 1 : i32
      %43 = arith.addi %10, %c1_i32_18 : i32
      %44 = arith.index_cast %43 : i32 to index
      %c0_19 = arith.constant 0 : index
      %c0_20 = arith.constant 0 : index
      %45 = vector.load %arg2[%44, %c0_19, %c0_20] : memref<16x8x384xf32, #tpu.memory_space<vmem>>, vector<1x8x384xf32>
      %46 = vector.shape_cast %45 : vector<1x8x384xf32> to vector<8x384xf32>
      %47 = arith.truncf %38 : vector<8x128xf32> to vector<8x128xbf16>
      %c0_21 = arith.constant 0 : index
      %c0_22 = arith.constant 0 : index
      %48 = vector.load %arg3[%c0_21, %c0_22] : memref<128x384xbf16, #tpu.memory_space<vmem>>, vector<128x384xbf16>
      %cst_23 = arith.constant dense<0.000000e+00> : vector<8x384xf32>
      %49 = tpu.matmul %47, %48, %cst_23 {dimension_numbers = #tpu.dot_dimension_numbers<[1], [0], [0], [1], [0, 0, 1, 1], [], []>} : vector<8x128xbf16>, vector<128x384xbf16>, vector<8x384xf32> -> vector<8x384xf32>
      %50 = vector.extract_strided_slice %46 {offsets = [0, 0], sizes = [8, 256], strides = [1, 1]} : vector<8x384xf32> to vector<8x256xf32>
      %51 = vector.extract_strided_slice %49 {offsets = [0, 0], sizes = [8, 256], strides = [1, 1]} : vector<8x384xf32> to vector<8x256xf32>
      %52 = arith.addf %50, %51 : vector<8x256xf32>
      %53 = arith.negf %52 : vector<8x256xf32>
      %54 = math.exp %53 : vector<8x256xf32>
      %cst_24 = arith.constant 1.000000e+00 : f32
      %55 = vector.broadcast %cst_24 : f32 to vector<8x256xf32>
      %56 = arith.addf %55, %54 : vector<8x256xf32>
      %57 = arith.divf %55, %56 : vector<8x256xf32>
      %58 = vector.extract_strided_slice %57 {offsets = [0, 0], sizes = [8, 128], strides = [1, 1]} : vector<8x256xf32> to vector<8x128xf32>
      %59 = vector.extract_strided_slice %57 {offsets = [0, 128], sizes = [8, 128], strides = [1, 1]} : vector<8x256xf32> to vector<8x128xf32>
      %60 = vector.extract_strided_slice %46 {offsets = [0, 256], sizes = [8, 128], strides = [1, 1]} : vector<8x384xf32> to vector<8x128xf32>
      %61 = vector.extract_strided_slice %49 {offsets = [0, 256], sizes = [8, 128], strides = [1, 1]} : vector<8x384xf32> to vector<8x128xf32>
      %62 = arith.addf %61, %5 : vector<8x128xf32>
      %63 = arith.mulf %58, %62 : vector<8x128xf32>
      %64 = arith.addf %60, %63 : vector<8x128xf32>
      %65 = math.tanh %64 : vector<8x128xf32>
      %cst_25 = arith.constant 1.000000e+00 : f32
      %66 = vector.broadcast %cst_25 : f32 to vector<8x128xf32>
      %67 = arith.subf %66, %59 : vector<8x128xf32>
      %68 = arith.mulf %67, %65 : vector<8x128xf32>
      %69 = arith.mulf %59, %38 : vector<8x128xf32>
      %70 = arith.addf %68, %69 : vector<8x128xf32>
      %71 = arith.index_cast %43 : i32 to index
      %c0_26 = arith.constant 0 : index
      %c0_27 = arith.constant 0 : index
      %72 = vector.load %arg5[%71, %c0_26, %c0_27] : memref<16x8x128xf32, #tpu.memory_space<vmem>>, vector<1x8x128xf32>
      %73 = vector.shape_cast %72 : vector<1x8x128xf32> to vector<8x128xf32>
      %74 = vector.shape_cast %70 : vector<8x128xf32> to vector<1x8x128xf32>
      tpu.vector_store %arg5[%71, %c0_26, %c0_27], %74 {strides = array<i32>} : memref<16x8x128xf32, #tpu.memory_space<vmem>>, vector<1x8x128xf32>,
      %c2_i32 = arith.constant 2 : i32
      %75 = arith.addi %10, %c2_i32 : i32
      %76 = arith.index_cast %75 : i32 to index
      %c0_28 = arith.constant 0 : index
      %c0_29 = arith.constant 0 : index
      %77 = vector.load %arg2[%76, %c0_28, %c0_29] : memref<16x8x384xf32, #tpu.memory_space<vmem>>, vector<1x8x384xf32>
      %78 = vector.shape_cast %77 : vector<1x8x384xf32> to vector<8x384xf32>
      %79 = arith.truncf %70 : vector<8x128xf32> to vector<8x128xbf16>
      %c0_30 = arith.constant 0 : index
      %c0_31 = arith.constant 0 : index
      %80 = vector.load %arg3[%c0_30, %c0_31] : memref<128x384xbf16, #tpu.memory_space<vmem>>, vector<128x384xbf16>
      %cst_32 = arith.constant dense<0.000000e+00> : vector<8x384xf32>
      %81 = tpu.matmul %79, %80, %cst_32 {dimension_numbers = #tpu.dot_dimension_numbers<[1], [0], [0], [1], [0, 0, 1, 1], [], []>} : vector<8x128xbf16>, vector<128x384xbf16>, vector<8x384xf32> -> vector<8x384xf32>
      %82 = vector.extract_strided_slice %78 {offsets = [0, 0], sizes = [8, 256], strides = [1, 1]} : vector<8x384xf32> to vector<8x256xf32>
      %83 = vector.extract_strided_slice %81 {offsets = [0, 0], sizes = [8, 256], strides = [1, 1]} : vector<8x384xf32> to vector<8x256xf32>
      %84 = arith.addf %82, %83 : vector<8x256xf32>
      %85 = arith.negf %84 : vector<8x256xf32>
      %86 = math.exp %85 : vector<8x256xf32>
      %cst_33 = arith.constant 1.000000e+00 : f32
      %87 = vector.broadcast %cst_33 : f32 to vector<8x256xf32>
      %88 = arith.addf %87, %86 : vector<8x256xf32>
      %89 = arith.divf %87, %88 : vector<8x256xf32>
      %90 = vector.extract_strided_slice %89 {offsets = [0, 0], sizes = [8, 128], strides = [1, 1]} : vector<8x256xf32> to vector<8x128xf32>
      %91 = vector.extract_strided_slice %89 {offsets = [0, 128], sizes = [8, 128], strides = [1, 1]} : vector<8x256xf32> to vector<8x128xf32>
      %92 = vector.extract_strided_slice %78 {offsets = [0, 256], sizes = [8, 128], strides = [1, 1]} : vector<8x384xf32> to vector<8x128xf32>
      %93 = vector.extract_strided_slice %81 {offsets = [0, 256], sizes = [8, 128], strides = [1, 1]} : vector<8x384xf32> to vector<8x128xf32>
      %94 = arith.addf %93, %5 : vector<8x128xf32>
      %95 = arith.mulf %90, %94 : vector<8x128xf32>
      %96 = arith.addf %92, %95 : vector<8x128xf32>
      %97 = math.tanh %96 : vector<8x128xf32>
      %cst_34 = arith.constant 1.000000e+00 : f32
      %98 = vector.broadcast %cst_34 : f32 to vector<8x128xf32>
      %99 = arith.subf %98, %91 : vector<8x128xf32>
      %100 = arith.mulf %99, %97 : vector<8x128xf32>
      %101 = arith.mulf %91, %70 : vector<8x128xf32>
      %102 = arith.addf %100, %101 : vector<8x128xf32>
      %103 = arith.index_cast %75 : i32 to index
      %c0_35 = arith.constant 0 : index
      %c0_36 = arith.constant 0 : index
      %104 = vector.load %arg5[%103, %c0_35, %c0_36] : memref<16x8x128xf32, #tpu.memory_space<vmem>>, vector<1x8x128xf32>
      %105 = vector.shape_cast %104 : vector<1x8x128xf32> to vector<8x128xf32>
      %106 = vector.shape_cast %102 : vector<8x128xf32> to vector<1x8x128xf32>
      tpu.vector_store %arg5[%103, %c0_35, %c0_36], %106 {strides = array<i32>} : memref<16x8x128xf32, #tpu.memory_space<vmem>>, vector<1x8x128xf32>,
      %c3_i32 = arith.constant 3 : i32
      %107 = arith.addi %10, %c3_i32 : i32
      %108 = arith.index_cast %107 : i32 to index
      %c0_37 = arith.constant 0 : index
      %c0_38 = arith.constant 0 : index
      %109 = vector.load %arg2[%108, %c0_37, %c0_38] : memref<16x8x384xf32, #tpu.memory_space<vmem>>, vector<1x8x384xf32>
      %110 = vector.shape_cast %109 : vector<1x8x384xf32> to vector<8x384xf32>
      %111 = arith.truncf %102 : vector<8x128xf32> to vector<8x128xbf16>
      %c0_39 = arith.constant 0 : index
      %c0_40 = arith.constant 0 : index
      %112 = vector.load %arg3[%c0_39, %c0_40] : memref<128x384xbf16, #tpu.memory_space<vmem>>, vector<128x384xbf16>
      %cst_41 = arith.constant dense<0.000000e+00> : vector<8x384xf32>
      %113 = tpu.matmul %111, %112, %cst_41 {dimension_numbers = #tpu.dot_dimension_numbers<[1], [0], [0], [1], [0, 0, 1, 1], [], []>} : vector<8x128xbf16>, vector<128x384xbf16>, vector<8x384xf32> -> vector<8x384xf32>
      %114 = vector.extract_strided_slice %110 {offsets = [0, 0], sizes = [8, 256], strides = [1, 1]} : vector<8x384xf32> to vector<8x256xf32>
      %115 = vector.extract_strided_slice %113 {offsets = [0, 0], sizes = [8, 256], strides = [1, 1]} : vector<8x384xf32> to vector<8x256xf32>
      %116 = arith.addf %114, %115 : vector<8x256xf32>
      %117 = arith.negf %116 : vector<8x256xf32>
      %118 = math.exp %117 : vector<8x256xf32>
      %cst_42 = arith.constant 1.000000e+00 : f32
      %119 = vector.broadcast %cst_42 : f32 to vector<8x256xf32>
      %120 = arith.addf %119, %118 : vector<8x256xf32>
      %121 = arith.divf %119, %120 : vector<8x256xf32>
      %122 = vector.extract_strided_slice %121 {offsets = [0, 0], sizes = [8, 128], strides = [1, 1]} : vector<8x256xf32> to vector<8x128xf32>
      %123 = vector.extract_strided_slice %121 {offsets = [0, 128], sizes = [8, 128], strides = [1, 1]} : vector<8x256xf32> to vector<8x128xf32>
      %124 = vector.extract_strided_slice %110 {offsets = [0, 256], sizes = [8, 128], strides = [1, 1]} : vector<8x384xf32> to vector<8x128xf32>
      %125 = vector.extract_strided_slice %113 {offsets = [0, 256], sizes = [8, 128], strides = [1, 1]} : vector<8x384xf32> to vector<8x128xf32>
      %126 = arith.addf %125, %5 : vector<8x128xf32>
      %127 = arith.mulf %122, %126 : vector<8x128xf32>
      %128 = arith.addf %124, %127 : vector<8x128xf32>
      %129 = math.tanh %128 : vector<8x128xf32>
      %cst_43 = arith.constant 1.000000e+00 : f32
      %130 = vector.broadcast %cst_43 : f32 to vector<8x128xf32>
      %131 = arith.subf %130, %123 : vector<8x128xf32>
      %132 = arith.mulf %131, %129 : vector<8x128xf32>
      %133 = arith.mulf %123, %102 : vector<8x128xf32>
      %134 = arith.addf %132, %133 : vector<8x128xf32>
      %135 = arith.index_cast %107 : i32 to index
      %c0_44 = arith.constant 0 : index
      %c0_45 = arith.constant 0 : index
      %136 = vector.load %arg5[%135, %c0_44, %c0_45] : memref<16x8x128xf32, #tpu.memory_space<vmem>>, vector<1x8x128xf32>
      %137 = vector.shape_cast %136 : vector<1x8x128xf32> to vector<8x128xf32>
      %138 = vector.shape_cast %134 : vector<8x128xf32> to vector<1x8x128xf32>
      tpu.vector_store %arg5[%135, %c0_44, %c0_45], %138 {strides = array<i32>} : memref<16x8x128xf32, #tpu.memory_space<vmem>>, vector<1x8x128xf32>,
      scf.yield %134 : vector<8x128xf32>
    }
    %c4_i32_5 = arith.constant 4 : i32
    %c0_6 = arith.constant 0 : index
    %c0_7 = arith.constant 0 : index
    %9 = vector.load %arg6[%c0_6, %c0_7] : memref<8x128xf32, #tpu.memory_space<vmem>>, vector<8x128xf32>
    tpu.vector_store %arg6[%c0_6, %c0_7], %8 {strides = array<i32>} : memref<8x128xf32, #tpu.memory_space<vmem>>, vector<8x128xf32>,
    return
  }
  func.func @transform_0(%arg0: i32, %arg1: i32) -> (i32, i32, i32) {
    %c0_i32 = arith.constant 0 : i32
    %c0_i32_0 = arith.constant 0 : i32
    return %arg1, %arg0, %c0_i32 : i32, i32, i32
  }
  func.func @transform_1(%arg0: i32, %arg1: i32) -> (i32, i32) {
    %c0_i32 = arith.constant 0 : i32
    %c0_i32_0 = arith.constant 0 : i32
    %c0_i32_1 = arith.constant 0 : i32
    return %c0_i32, %c0_i32_0 : i32, i32
  }
  func.func @transform_2(%arg0: i32, %arg1: i32) -> (i32, i32) {
    %c0_i32 = arith.constant 0 : i32
    %c0_i32_0 = arith.constant 0 : i32
    %c0_i32_1 = arith.constant 0 : i32
    return %c0_i32, %c0_i32_0 : i32, i32
  }
  func.func @transform_3(%arg0: i32, %arg1: i32) -> (i32, i32, i32) {
    %c0_i32 = arith.constant 0 : i32
    %c0_i32_0 = arith.constant 0 : i32
    return %arg1, %arg0, %c0_i32 : i32, i32, i32
  }
}

</mosaic_0001>

<bundles_post_ra>
// kernel: multilayer_base_forward.2
= control target key start
LH: loop header
LB: loop body
LE: loop exit
PB: predicated region body
PF: predicated region fallthrough
CT: control target
= control target key end

     0   :  { %s2175_s12 = smov 0   ;;  %s2177_s13 = smov 0   ;;  %s2741_s0 = inlined_call_operand.vmem [shape: f32[32,16,384], index: 0, kind: input, shape index: {}]   ;;  %s2742_s1 = inlined_call_operand.vmem [shape: bf16[128,384], index: 1, kind: input, shape index: {}]   ;;  %s2743_s2 = inlined_call_operand.vmem [shape: f32[1,128], index: 2, kind: input, shape index: {}]   ;;  %s2744_s3 = inlined_call_operand.vmem [shape: f32[32,16,128], index: 3, kind: output, shape index: {}]  }
   0x1   :  { %s2179_s14 = smov 0   ;;  %s2181_s15 = smov 0  }
   0x2   :  { %s2183_s16 = smov 0   ;;  %s2185_s17 = smov 0  }
   0x3   :  { %s2187_s18 = smov 0  }
   0x4 LB: > { %s22_s19 = sadd.s32 1, %s2133_s16  ;;  %s25_s20 = sadd.s32 1, %s2137_s17  ;;  %s2141_s18 = sphi %s2187_s18, %s13_s18   ;;  %s2137_s17 = sphi %s2185_s17, %s2752_s17   ;;  %s2133_s16 = sphi %s2183_s16, %s2751_s16   ;;  %s2129_s15 = sphi %s2181_s15, %s2750_s15   ;;  %s2125_s14 = sphi %s2179_s14, %s2749_s14   ;;  %s2121_s13 = sphi %s2177_s13, %s2748_s13   ;;  %s2117_s12 = sphi %s2175_s12, %s2747_s12  }
   0x5   : > { %p23_p0 = scmp.ge.s32.totalorder %s22_s19, 2  ;;  %s1632_s21 = sadd.s32 4294967295, %s2141_s18  }
   0x6   : > { %p41_p1 = scmp.ne.s32.totalorder %s2121_s13, %s2117_s12  ;;  %p42_p2 = scmp.eq.s32.totalorder %s2141_s18, 0 }
   0x7   : > { %s2754_s19 = smov (%p23_p0, %s22_s19), 0  ;;  %s2756_s20 = smov (!%p23_p0, %s25_s20), %s2137_s17 }
   0x8   : > { %p27_p3 = scmp.ge.s32.totalorder %s2756_s20, 2  ;;  %p115_p4 = scmp.eq.s32.totalorder %s1632_s21, 3 }
   0x9   : > { %s29_s22 = ssub.s32 %s2133_s16, %s2754_s19  ;;  %p43_p5 = por %p42_p2, %p41_p1 }
   0xa   : > { %s2758_s20 = smov (%p27_p3, %s2756_s20), 0  ;;  %p2223_p6 = por %p115_p4, %p41_p1 }
   0xb   : > { %s30_s24 = ssub.s32 %s2137_s17, %s2758_s20  ;;  %s34_s26 = sadd.s32 1, %s2121_s13 }
   0xc   : > { %s31_s25 = sor.u32 %s30_s24, %s29_s22  ;;  %p1635_p8 = scmp.ge.s32.totalorder %s2141_s18, 4 }
   0xd   : > { %p32_p7 = scmp.eq.s32.totalorder %s31_s25, 0 }
   0xe   : > { %143 = sbr.rel (%p1635_p8) target bundleno = 52 (0x34), region = 24 }
   0xf   : > { %s2231_s27 = scalar_select %p32_p7, %s2121_s13, %s34_s26  }
  0x13   : > { %146 = sbr.rel (!%p43_p5) target bundleno = 52 (0x34), region = 28  ;;  %s148_s28 = sand.u32 (%p43_p5), 1, %s2121_s13  }
  0x14   : > { %s1904_s29 = smul.u32 (%p43_p5), 3, %s2137_s17 }
  0x15   : > { %s1903_s30 = smul.u32 (%p43_p5), 384, %s148_s28 }
  0x16   : > { %s1905_s4 = smul.u32 (%p43_p5), 96, %s2133_s16 }
  0x17   : > { %s2245_s10 = scalar_lea.vmem (%p43_p5), [#allocation3], %s1903_s30 }
  0x18   : > { %s154_s5 = sadd.s32 %s1905_s4, %s1904_s29 }
  0x19   : > { %s1638_s6 = sshll.u32 %s154_s5, 3 }
  0x1a   : > { %s2240_s9 = scalar_lea.vmem %s2741_s0, %s1638_s6 }
  0x1b   : > { %v169_v0 = vld [vmem:[%s2240_s9] sm:$0xff]  ;;  %v171_v1 = vld [vmem:[%s2240_s9 + $0x8] sm:$0xff]  ;;  %v173_v2 = vld [vmem:[%s2240_s9 + $0x10] sm:$0xff] }
  0x1c   : > { %170 = vst [vmem:[%s2245_s10] sm:$0xff] %v169_v0  ;;  %172 = vst [vmem:[%s2245_s10 + $0x8] sm:$0xff] %v171_v1  ;;  %v175_v3 = vld [vmem:[%s2240_s9 + $0x30] sm:$0xff]  ;;  %v177_v4 = vld [vmem:[%s2240_s9 + $0x38] sm:$0xff] }
  0x1d   : > { %174 = vst [vmem:[%s2245_s10 + $0x10] sm:$0xff] %v173_v2  ;;  %v179_v5 = vld [vmem:[%s2240_s9 + $0x40] sm:$0xff]  ;;  %176 = vst [vmem:[%s2245_s10 + $0x18] sm:$0xff] %v175_v3  ;;  %v183_v7 = vld [vmem:[%s2240_s9 + $0x68] sm:$0xff] }
  0x1e   : > { %178 = vst [vmem:[%s2245_s10 + $0x20] sm:$0xff] %v177_v4  ;;  %180 = vst [vmem:[%s2245_s10 + $0x28] sm:$0xff] %v179_v5  ;;  %v181_v6 = vld [vmem:[%s2240_s9 + $0x60] sm:$0xff]  ;;  %v185_v8 = vld [vmem:[%s2240_s9 + $0x70] sm:$0xff] }
  0x1f   : > { %182 = vst [vmem:[%s2245_s10 + $0x30] sm:$0xff] %v181_v6  ;;  %184 = vst [vmem:[%s2245_s10 + $0x38] sm:$0xff] %v183_v7  ;;  %v187_v9 = vld [vmem:[%s2240_s9 + $0x90] sm:$0xff]  ;;  %v189_v10 = vld [vmem:[%s2240_s9 + $0x98] sm:$0xff] }
  0x20   : > { %186 = vst [vmem:[%s2245_s10 + $0x40] sm:$0xff] %v185_v8  ;;  %v191_v11 = vld [vmem:[%s2240_s9 + $0xa0] sm:$0xff]  ;;  %188 = vst [vmem:[%s2245_s10 + $0x48] sm:$0xff] %v187_v9  ;;  %v195_v13 = vld [vmem:[%s2240_s9 + $0xc8] sm:$0xff] }
  0x21   : > { %190 = vst [vmem:[%s2245_s10 + $0x50] sm:$0xff] %v189_v10  ;;  %192 = vst [vmem:[%s2245_s10 + $0x58] sm:$0xff] %v191_v11  ;;  %v193_v12 = vld [vmem:[%s2240_s9 + $0xc0] sm:$0xff]  ;;  %v197_v14 = vld [vmem:[%s2240_s9 + $0xd0] sm:$0xff] }
  0x22   : > { %194 = vst [vmem:[%s2245_s10 + $0x60] sm:$0xff] %v193_v12  ;;  %196 = vst [vmem:[%s2245_s10 + $0x68] sm:$0xff] %v195_v13  ;;  %v199_v15 = vld [vmem:[%s2240_s9 + $0xf0] sm:$0xff]  ;;  %v201_v16 = vld [vmem:[%s2240_s9 + $0xf8] sm:$0xff] }
  0x23   : > { %198 = vst [vmem:[%s2245_s10 + $0x70] sm:$0xff] %v197_v14  ;;  %v203_v17 = vld [vmem:[%s2240_s9 + $0x100] sm:$0xff]  ;;  %200 = vst [vmem:[%s2245_s10 + $0x78] sm:$0xff] %v199_v15  ;;  %v207_v19 = vld [vmem:[%s2240_s9 + $0x128] sm:$0xff] }
  0x24   : > { %202 = vst [vmem:[%s2245_s10 + $0x80] sm:$0xff] %v201_v16  ;;  %204 = vst [vmem:[%s2245_s10 + $0x88] sm:$0xff] %v203_v17  ;;  %v205_v18 = vld [vmem:[%s2240_s9 + $0x120] sm:$0xff]  ;;  %v209_v20 = vld [vmem:[%s2240_s9 + $0x130] sm:$0xff] }
  0x25   : > { %206 = vst [vmem:[%s2245_s10 + $0x90] sm:$0xff] %v205_v18  ;;  %208 = vst [vmem:[%s2245_s10 + $0x98] sm:$0xff] %v207_v19  ;;  %v211_v21 = vld [vmem:[%s2240_s9 + $0x150] sm:$0xff]  ;;  %v213_v22 = vld [vmem:[%s2240_s9 + $0x158] sm:$0xff] }
  0x26   : > { %210 = vst [vmem:[%s2245_s10 + $0xa0] sm:$0xff] %v209_v20  ;;  %v215_v23 = vld [vmem:[%s2240_s9 + $0x160] sm:$0xff]  ;;  %212 = vst [vmem:[%s2245_s10 + $0xa8] sm:$0xff] %v211_v21  ;;  %v219_v25 = vld [vmem:[%s2240_s9 + $0x188] sm:$0xff] }
  0x27   : > { %214 = vst [vmem:[%s2245_s10 + $0xb0] sm:$0xff] %v213_v22  ;;  %216 = vst [vmem:[%s2245_s10 + $0xb8] sm:$0xff] %v215_v23  ;;  %v217_v24 = vld [vmem:[%s2240_s9 + $0x180] sm:$0xff]  ;;  %v221_v26 = vld [vmem:[%s2240_s9 + $0x190] sm:$0xff] }
  0x28   : > { %218 = vst [vmem:[%s2245_s10 + $0xc0] sm:$0xff] %v217_v24  ;;  %220 = vst [vmem:[%s2245_s10 + $0xc8] sm:$0xff] %v219_v25  ;;  %v223_v27 = vld [vmem:[%s2240_s9 + $0x1b0] sm:$0xff]  ;;  %v225_v28 = vld [vmem:[%s2240_s9 + $0x1b8] sm:$0xff] }
  0x29   : > { %222 = vst [vmem:[%s2245_s10 + $0xd0] sm:$0xff] %v221_v26  ;;  %v227_v29 = vld [vmem:[%s2240_s9 + $0x1c0] sm:$0xff]  ;;  %224 = vst [vmem:[%s2245_s10 + $0xd8] sm:$0xff] %v223_v27  ;;  %v231_v31 = vld [vmem:[%s2240_s9 + $0x1e8] sm:$0xff] }
  0x2a   : > { %226 = vst [vmem:[%s2245_s10 + $0xe0] sm:$0xff] %v225_v28  ;;  %228 = vst [vmem:[%s2245_s10 + $0xe8] sm:$0xff] %v227_v29  ;;  %v229_v30 = vld [vmem:[%s2240_s9 + $0x1e0] sm:$0xff]  ;;  %v233_v32 = vld [vmem:[%s2240_s9 + $0x1f0] sm:$0xff] }
  0x2b   : > { %230 = vst [vmem:[%s2245_s10 + $0xf0] sm:$0xff] %v229_v30  ;;  %232 = vst [vmem:[%s2245_s10 + $0xf8] sm:$0xff] %v231_v31  ;;  %v235_v33 = vld [vmem:[%s2240_s9 + $0x210] sm:$0xff]  ;;  %v237_v34 = vld [vmem:[%s2240_s9 + $0x218] sm:$0xff] }
  0x2c   : > { %234 = vst [vmem:[%s2245_s10 + $0x100] sm:$0xff] %v233_v32  ;;  %v239_v35 = vld [vmem:[%s2240_s9 + $0x220] sm:$0xff]  ;;  %236 = vst [vmem:[%s2245_s10 + $0x108] sm:$0xff] %v235_v33  ;;  %v243_v37 = vld [vmem:[%s2240_s9 + $0x248] sm:$0xff] }
  0x2d   : > { %238 = vst [vmem:[%s2245_s10 + $0x110] sm:$0xff] %v237_v34  ;;  %240 = vst [vmem:[%s2245_s10 + $0x118] sm:$0xff] %v239_v35  ;;  %v241_v36 = vld [vmem:[%s2240_s9 + $0x240] sm:$0xff]  ;;  %v245_v38 = vld [vmem:[%s2240_s9 + $0x250] sm:$0xff] }
  0x2e   : > { %242 = vst [vmem:[%s2245_s10 + $0x120] sm:$0xff] %v241_v36  ;;  %244 = vst [vmem:[%s2245_s10 + $0x128] sm:$0xff] %v243_v37  ;;  %v247_v39 = vld [vmem:[%s2240_s9 + $0x270] sm:$0xff]  ;;  %v249_v40 = vld [vmem:[%s2240_s9 + $0x278] sm:$0xff] }
  0x2f   : > { %246 = vst [vmem:[%s2245_s10 + $0x130] sm:$0xff] %v245_v38  ;;  %v251_v41 = vld [vmem:[%s2240_s9 + $0x280] sm:$0xff]  ;;  %248 = vst [vmem:[%s2245_s10 + $0x138] sm:$0xff] %v247_v39  ;;  %v255_v43 = vld [vmem:[%s2240_s9 + $0x2a8] sm:$0xff] }
  0x30   : > { %250 = vst [vmem:[%s2245_s10 + $0x140] sm:$0xff] %v249_v40  ;;  %252 = vst [vmem:[%s2245_s10 + $0x148] sm:$0xff] %v251_v41  ;;  %v253_v42 = vld [vmem:[%s2240_s9 + $0x2a0] sm:$0xff]  ;;  %v257_v44 = vld [vmem:[%s2240_s9 + $0x2b0] sm:$0xff] }
  0x31   : > { %254 = vst [vmem:[%s2245_s10 + $0x150] sm:$0xff] %v253_v42  ;;  %256 = vst [vmem:[%s2245_s10 + $0x158] sm:$0xff] %v255_v43  ;;  %v259_v45 = vld [vmem:[%s2240_s9 + $0x2d0] sm:$0xff]  ;;  %v261_v46 = vld [vmem:[%s2240_s9 + $0x2d8] sm:$0xff] }
  0x32   : > { %258 = vst [vmem:[%s2245_s10 + $0x160] sm:$0xff] %v257_v44  ;;  %v263_v47 = vld [vmem:[%s2240_s9 + $0x2e0] sm:$0xff]  ;;  %260 = vst [vmem:[%s2245_s10 + $0x168] sm:$0xff] %v259_v45 }
  0x33   : > { %262 = vst [vmem:[%s2245_s10 + $0x170] sm:$0xff] %v261_v46  ;;  %264 = vst [vmem:[%s2245_s10 + $0x178] sm:$0xff] %v263_v47 }
  0x34 PF: > { %p1639_p9 = scmp.ge.s32.totalorder %s2141_s18, 1  ;;  %p269_p10 = scmp.lt.s32.totalorder %s2141_s18, 5 }
  0x36   : > { %p270_p11 = pnand %p1639_p9, %p269_p10 }
  0x37   : > { %s276_s11 = sand.u32 (!%p270_p11), 1, %s2117_s12   ;;  %p1641_p12 = scmp.ne.s32.totalorder (!%p270_p11), %s2125_s14, 0 }
  0x38   : > { %273 = sbr.rel (%p270_p11) target bundleno = 1129 (0x469), region = 51  ;;  %s1640_s22 = sshll.u32 (!%p270_p11), %s276_s11, 7 }
  0x39   : > { %s2343_s21 = smul.u32 (!%p270_p11), 384, %s276_s11  ;;  %s2346_s25 = scalar_lea.vmem (!%p270_p11), [#allocation4], %s1640_s22 }
  0x3b   : > { %s278_s24 = scalar_lea.vmem (!%p270_p11), [#allocation3], %s2343_s21 }
  0x3d   : > { %304 = sbr.rel (%p1641_p12) target bundleno = 68 (0x44), region = 59 }
  0x42   : > { %v2151_v48 = vmov 0.0  }
  0x43   : > { %305 = vst [vmem:[#allocation2] sm:$0xff] %v2151_v48 }
  0x44 PF: > { %v2352_v49 = vld [vmem:[%s2743_s2] ss:$0 sm:$0xff]  ;;  %s2356_s12 = smov 0  }
  0x4a   : > { %v313_v50 = vld [vmem:[#allocation2] sm:$0xff]  }
  0x4b LB: >> { %v2367_v51 = vld [vmem:[%s2742_s1 + $0xac] ss:$12 sps:$4 sm:$0xff]   ;;  %v2372_v52 = vld [vmem:[%s2742_s1 + $0xa8] ss:$12 sps:$4 sm:$0xff]   ;;  %v2152_v53 = vmov 0.0   ;;  %v2153_v54 = vmov 0   ;;  %v328_v11 = vpack.c.bf16 %v2145_v50, %v2145_v50  ;;  %s2149_s12 = sphi %s2356_s12, %s319_s12   ;;  %v2145_v50 = vphi %v313_v50, %v2746_v50  }
  0x4c   : >> { %1823 = vmatprep.subr.bf16.mxu1 %v2152_v53  ;;  %521 = vmatprep.mubr.bf16.mxu0 %v2153_v54  ;;  %v2380_v55 = vld [vmem:[%s2742_s1 + $0x94] ss:$12 sps:$4 sm:$0xff]   ;;  %vm2154_vm0 = vmmov 0   ;;  %v2388_v56 = vld [vmem:[%s2742_s1 + $0x90] ss:$12 sps:$4 sm:$0xff]   ;;  %s1781_s28 = smul.u32 96, %s2149_s12 }
  0x4d   : >> { %489 = vmatprep.subr.bf16.mxu0 %v2367_v51  ;;  %1839 = vmatprep.mubr.msk.bf16.mxu1 %vm2154_vm0, %v2152_v53  ;;  %v2394_v57 = vld [vmem:[%s2742_s1 + $0x7c] ss:$12 sps:$4 sm:$0xff]   ;;  %v2400_v58 = vld [vmem:[%s2742_s1 + $0x78] ss:$12 sps:$4 sm:$0xff]   ;;  %v2415_v61 = vld [vmem:[%s2742_s1 + $0x60] ss:$12 sps:$4 sm:$0xff]  }
  0x4e   : >> { %490 = vmatpush1.bf16.msra.mxu0 %v2372_v52  ;;  %v2406_v59 = vld [vmem:[%s2742_s1 + $0x64] ss:$12 sps:$4 sm:$0xff]   ;;  %v2420_v62 = vld [vmem:[%s2742_s1 + $0x4c] ss:$12 sps:$4 sm:$0xff]   ;;  %v2430_v0 = vld [vmem:[%s2742_s1 + $0x48] ss:$12 sps:$4 sm:$0xff]   ;;  %s2553_s29 = scalar_lea.vmem %s278_s24, %s1781_s28 [#allocation3] }
  0x4f   : >> { %491 = vmatprep.subr.bf16.mxu0 %v2380_v55  ;;  %v2004_v60 = vld [vmem:[%s2742_s1 + $0xb0] ss:$12 sps:$4 sm:$0xff]   ;;  %v2008_v63 = vld [vmem:[%s2742_s1 + $0x98] ss:$12 sps:$4 sm:$0xff]   ;;  %v2436_v1 = vld [vmem:[%s2742_s1 + $0x34] ss:$12 sps:$4 sm:$0xff]  }
  0x50   : >> { %1824 = vmatpush3.bf16.msra.mxu1 %v2004_v60  ;;  %v2009_v2 = vld [vmem:[%s2742_s1 + $0x80] ss:$12 sps:$4 sm:$0xff]   ;;  %v2445_v3 = vld [vmem:[%s2742_s1 + $0x30] ss:$12 sps:$4 sm:$0xff]   ;;  %v2010_v5 = vld [vmem:[%s2742_s1 + $0x68] ss:$12 sps:$4 sm:$0xff]  }
  0x51   : >> { %1825 = vmatprep.subr.bf16.mxu1 %v2152_v53  ;;  %v2451_v4 = vld [vmem:[%s2742_s1 + $0x1c] ss:$12 sps:$4 sm:$0xff]   ;;  %v2461_v6 = vld [vmem:[%s2742_s1 + $0x18] ss:$12 sps:$4 sm:$0xff]   ;;  %v2477_v9 = vld [vmem:[%s2742_s1] ss:$12 sps:$4 sm:$0xff]  }
  0x52   : >> { %492 = vmatpush1.bf16.msra.mxu0 %v2388_v56  ;;  %v2467_v7 = vld [vmem:[%s2742_s1 + $0x4] ss:$12 sps:$4 sm:$0xff]   ;;  %v2013_v12 = vld [vmem:[%s2742_s1 + $0x20] ss:$12 sps:$4 sm:$0xff]   ;;  %v2014_v13 = vld [vmem:[%s2742_s1 + $0x8] ss:$12 sps:$4 sm:$0xff]  }
  0x53   : >> { %493 = vmatprep.subr.bf16.mxu0 %v2394_v57  ;;  %v2011_v8 = vld [vmem:[%s2742_s1 + $0x50] ss:$12 sps:$4 sm:$0xff]   ;;  %v2012_v10 = vld [vmem:[%s2742_s1 + $0x38] ss:$12 sps:$4 sm:$0xff]   ;;  %v2017_v16 = vld [vmem:[%s2742_s1 + $0x80] ss:$12 sps:$4 sm:$0xff]  }
  0x54   : >> { %1826 = vmatpush3.bf16.msra.mxu1 %v2008_v63  ;;  %v2015_v14 = vld [vmem:[%s2742_s1 + $0xb0] ss:$12 sps:$4 sm:$0xff]   ;;  %v2016_v15 = vld [vmem:[%s2742_s1 + $0x98] ss:$12 sps:$4 sm:$0xff]   ;;  %v2018_v17 = vld [vmem:[%s2742_s1 + $0x68] ss:$12 sps:$4 sm:$0xff]  }
  0x55   : >> { %1827 = vmatprep.subr.bf16.mxu1 %v2152_v53  ;;  %v2019_v18 = vld [vmem:[%s2742_s1 + $0x50] ss:$12 sps:$4 sm:$0xff]   ;;  %v2020_v19 = vld [vmem:[%s2742_s1 + $0x38] ss:$12 sps:$4 sm:$0xff]   ;;  %v2021_v20 = vld [vmem:[%s2742_s1 + $0x20] ss:$12 sps:$4 sm:$0xff]  }
  0x56   : >> { %494 = vmatpush1.bf16.msra.mxu0 %v2400_v58  ;;  %v2022_v21 = vld [vmem:[%s2742_s1 + $0x8] ss:$12 sps:$4 sm:$0xff]   ;;  %v325_v22 = vld [vmem:[%s2553_s29] sm:$0xff]  ;;  %s1782_s30 = sshll.u32 %s2149_s12, 5  ;;  %s319_s12 = sadd.s32 1, %s2149_s12  }
  0x57   : >> { %495 = vmatprep.subr.bf16.mxu0 %v2406_v59  ;;  %v326_v27 = vld [vmem:[%s2553_s29 + $0x8] sm:$0xff]  ;;  %v327_v42 = vld [vmem:[%s2553_s29 + $0x10] sm:$0xff]  ;;  %s2562_s4 = scalar_lea.vmem %s2346_s25, %s1782_s30 [#allocation4]  ;;  %p316_p13 = scmp.ge.s32.totalorder %s319_s12, 4  }
  0x58   : >> { %1828 = vmatpush3.bf16.msra.mxu1 %v2009_v2 }
  0x59   : >> { %1829 = vmatprep.subr.bf16.mxu1 %v2152_v53 }
  0x5a   : >> { %496 = vmatpush1.bf16.msra.mxu0 %v2415_v61 }
  0x5b   : >> { %497 = vmatprep.subr.bf16.mxu0 %v2420_v62 }
  0x5c   : >> { %1830 = vmatpush3.bf16.msra.mxu1 %v2010_v5  ;;  %v2024_v5 = vld [vmem:[%s2742_s1 + $0x98] ss:$12 sps:$4 sm:$0xff]  }
  0x5d   : >> { %1831 = vmatprep.subr.bf16.mxu1 %v2152_v53 }
  0x5e   : >> { %498 = vmatpush1.bf16.msra.mxu0 %v2430_v0 }
  0x5f   : >> { %499 = vmatprep.subr.bf16.mxu0 %v2436_v1 }
  0x60   : >> { %1832 = vmatpush3.bf16.msra.mxu1 %v2011_v8  ;;  %v2025_v8 = vld [vmem:[%s2742_s1 + $0x80] ss:$12 sps:$4 sm:$0xff]  }
  0x61   : >> { %1833 = vmatprep.subr.bf16.mxu1 %v2152_v53 }
  0x62   : >> { %500 = vmatpush1.bf16.msra.mxu0 %v2445_v3 }
  0x63   : >> { %501 = vmatprep.subr.bf16.mxu0 %v2451_v4 }
  0x64   : >> { %1834 = vmatpush3.bf16.msra.mxu1 %v2012_v10  ;;  %v2027_v10 = vld [vmem:[%s2742_s1 + $0x50] ss:$12 sps:$4 sm:$0xff]  }
  0x65   : >> { %1835 = vmatprep.subr.bf16.mxu1 %v2152_v53 }
  0x66   : >> { %502 = vmatpush1.bf16.msra.mxu0 %v2461_v6 }
  0x67   : >> { %503 = vmatprep.subr.bf16.mxu0 %v2467_v7 }
  0x68   : >> { %1836 = vmatpush3.bf16.msra.mxu1 %v2013_v12  ;;  %v2029_v12 = vld [vmem:[%s2742_s1 + $0x20] ss:$12 sps:$4 sm:$0xff]  }
  0x69   : >> { %1837 = vmatprep.subr.bf16.mxu1 %v2152_v53 }
  0x6a   : >> { %504 = vmatpush1.bf16.msra.mxu0 %v2477_v9 }
  0x6b   : >> { %763 = vmatprep.subr.bf16.mxu0 %v2367_v51 }
  0x6c   : >> { %1838 = vmatpush3.bf16.msra.mxu1 %v2014_v13  ;;  %v2030_v13 = vld [vmem:[%s2742_s1 + $0x8] ss:$12 sps:$4 sm:$0xff]  }
  0x6d   : >> { %522 = vmatmul.mubr.bf16.vlgmr.msra.gmra.mxu0 %v328_v11  ;;  %1843 = vmatprep.subr.bf16.mxu1 %v2152_v53 }
  0x6e   : >> { %764 = vmatpush1.bf16.msra.mxu0 %v2372_v52  ;;  %795 = vmatprep.mubr.bf16.mxu0 %v2153_v54 }
  0x6f   : >> { %765 = vmatprep.subr.bf16.mxu0 %v2380_v55  ;;  %1840 = vmatmul.mubr.bf16.vlgmr.msra.gmra.mxu1 %v328_v11  ;;  %v2028_v11 = vld [vmem:[%s2742_s1 + $0x38] ss:$12 sps:$4 sm:$0xff]  }
  0x70   : >> { %1859 = vmatprep.mubr.msk.bf16.mxu1 %vm2154_vm0, %v2152_v53  ;;  %1844 = vmatpush3.bf16.msra.mxu1 %v2015_v14  ;;  %v1675_v14 = vld [vmem:[%s2553_s29 + $0x18] sm:$0xff] }
  0x71   : >> { %1845 = vmatprep.subr.bf16.mxu1 %v2152_v53 }
  0x72   : >> { %766 = vmatpush1.bf16.msra.mxu0 %v2388_v56 }
  0x73   : >> { %767 = vmatprep.subr.bf16.mxu0 %v2394_v57 }
  0x74   : >> { %1846 = vmatpush3.bf16.msra.mxu1 %v2016_v15 }
  0x75   : >> { %1847 = vmatprep.subr.bf16.mxu1 %v2152_v53 }
  0x76   : >> { %768 = vmatpush1.bf16.msra.mxu0 %v2400_v58 }
  0x77   : >> { %769 = vmatprep.subr.bf16.mxu0 %v2406_v59 }
  0x78   : >> { %1848 = vmatpush3.bf16.msra.mxu1 %v2017_v16 }
  0x79   : >> { %1849 = vmatprep.subr.bf16.mxu1 %v2152_v53 }
  0x7a   : >> { %770 = vmatpush1.bf16.msra.mxu0 %v2415_v61 }
  0x7b   : >> { %771 = vmatprep.subr.bf16.mxu0 %v2420_v62 }
  0x7c   : >> { %1850 = vmatpush3.bf16.msra.mxu1 %v2018_v17 }
  0x7d   : >> { %1851 = vmatprep.subr.bf16.mxu1 %v2152_v53 }
  0x7e   : >> { %772 = vmatpush1.bf16.msra.mxu0 %v2430_v0 }
  0x7f   : >> { %773 = vmatprep.subr.bf16.mxu0 %v2436_v1 }
  0x80   : >> { %1852 = vmatpush3.bf16.msra.mxu1 %v2019_v18 }
  0x81   : >> { %1853 = vmatprep.subr.bf16.mxu1 %v2152_v53 }
  0x82   : >> { %774 = vmatpush1.bf16.msra.mxu0 %v2445_v3 }
  0x83   : >> { %775 = vmatprep.subr.bf16.mxu0 %v2451_v4 }
  0x84   : >> { %1854 = vmatpush3.bf16.msra.mxu1 %v2020_v19 }
  0x85   : >> { %1855 = vmatprep.subr.bf16.mxu1 %v2152_v53 }
  0x86   : >> { %776 = vmatpush1.bf16.msra.mxu0 %v2461_v6 }
  0x87   : >> { %777 = vmatprep.subr.bf16.mxu0 %v2467_v7 }
  0x88   : >> { %1856 = vmatpush3.bf16.msra.mxu1 %v2021_v20 }
  0x89   : >> { %1857 = vmatprep.subr.bf16.mxu1 %v2152_v53 }
  0x8a   : >> { %778 = vmatpush1.bf16.msra.mxu0 %v2477_v9 }
  0x8b   : >> { %1037 = vmatprep.subr.bf16.mxu0 %v2367_v51 }
  0x8c   : >> { %1858 = vmatpush3.bf16.msra.mxu1 %v2022_v21  ;;  %v1676_v21 = vld [vmem:[%s2553_s29 + $0x20] sm:$0xff] }
  0x8d   : >> { %1863 = vmatprep.subr.bf16.mxu1 %v2152_v53 }
 0x12d   : >> { %v523_v23 = vpop.f32.mrf.mxu0 }
 0x12e   : >> { %v570_v24 = vadd.f32 %v523_v23, %v325_v22 }
 0x12f   : >> { %v525_v25 = vpop.f32.mrf.mxu0  ;;  %v564_v31 = vpop.f32.mrf.mxu1 }
 0x130   : >> { %v1670_v26 = vmul.f32 -1.442695, %v570_v24  ;;  %v571_v30 = vadd.f32 %v525_v25, %v326_v27  ;;  %v584_v40 = vadd.f32 %v2352_v49, %v564_v31 }
 0x131   : >> { %v527_v28 = vpop.f32.mrf.mxu0  ;;  %v1841_v33 = vpop.f32.mrf.mxu1 }
 0x132   : >> { %2039 = vpow2.f32 %v1670_v26  ;;  %v1671_v32 = vmul.f32 -1.442695, %v571_v30 }
 0x133   : >> { %v528_v29 = vpop.f32.mrf.mxu0  ;;  %v567_v34 = vpop.f32.mrf.mxu1 }
 0x134   : >> { %2041 = vpow2.f32 %v1671_v32  ;;  %v1677_v34 = vld [vmem:[%s2553_s29 + $0x28] sm:$0xff] }
 0x135   : >> { %v1842_v35 = vpop.f32.mrf.mxu1 }
 0x13f   : >> { %v2040_v36 = vpop.eup %2039 }
 0x140   : >> { %v578_v37 = vadd.f32 1.0, %v2040_v36 }
 0x141   : >> { %v2042_v38 = vpop.eup %2041 }
 0x142   : >> { %2043 = vrcp.f32 %v578_v37  ;;  %v579_v39 = vadd.f32 1.0, %v2042_v38 }
 0x144   : >> { %2045 = vrcp.f32 %v579_v39 }
 0x14f   : >> { %v2044_v41 = vpop.eup %2043 }
 0x150   : >> { %v585_v43 = vmul.f32 %v2044_v41, %v584_v40 }
 0x151   : >> { %v2046_v45 = vpop.eup %2045 }
 0x152   : >> { %v586_v44 = vadd.f32 %v585_v43, %v327_v42  ;;  %v588_v46 = vsub.f32 1.0, %v2046_v45  ;;  %v590_v60 = vmul.f32 %v2145_v50, %v2046_v45  ;;  %v2023_v50 = vld [vmem:[%s2742_s1 + $0xb0] ss:$12 sps:$4 sm:$0xff]  }
 0x154   : >> { %2047 = vtanh.f32 %v586_v44 }
 0x161   : >> { %v2048_v47 = vpop.eup %2047 }
 0x162   : >> { %v589_v48 = vmul.f32 %v2048_v47, %v588_v46 }
 0x164   : >> { %v2564_v63 = vadd.f32 %v590_v60, %v589_v48 }
 0x166   : >> { %594 = vst [vmem:[%s2562_s4] sm:$0xff] %v2564_v63  ;;  %v602_v2 = vpack.c.bf16 %v2564_v63, %v2564_v63 }
 0x168   : >> { %796 = vmatmul.mubr.bf16.vlgmr.msra.gmra.mxu0 %v602_v2  ;;  %1860 = vmatmul.mubr.bf16.vlgmr.msra.gmra.mxu1 %v602_v2 }
 0x169   : >> { %1038 = vmatpush1.bf16.msra.mxu0 %v2372_v52  ;;  %1069 = vmatprep.mubr.bf16.mxu0 %v2153_v54 }
 0x16a   : >> { %1039 = vmatprep.subr.bf16.mxu0 %v2380_v55  ;;  %1879 = vmatprep.mubr.msk.bf16.mxu1 %vm2154_vm0, %v2152_v53 }
 0x16b   : >> { %1864 = vmatpush3.bf16.msra.mxu1 %v2023_v50 }
 0x16c   : >> { %1865 = vmatprep.subr.bf16.mxu1 %v2152_v53 }
 0x16d   : >> { %1040 = vmatpush1.bf16.msra.mxu0 %v2388_v56 }
 0x16e   : >> { %1041 = vmatprep.subr.bf16.mxu0 %v2394_v57 }
 0x16f   : >> { %1866 = vmatpush3.bf16.msra.mxu1 %v2024_v5 }
 0x170   : >> { %1867 = vmatprep.subr.bf16.mxu1 %v2152_v53 }
 0x171   : >> { %1042 = vmatpush1.bf16.msra.mxu0 %v2400_v58 }
 0x172   : >> { %1043 = vmatprep.subr.bf16.mxu0 %v2406_v59 }
 0x173   : >> { %1868 = vmatpush3.bf16.msra.mxu1 %v2025_v8 }
 0x174   : >> { %1869 = vmatprep.subr.bf16.mxu1 %v2152_v53 }
 0x175   : >> { %1044 = vmatpush1.bf16.msra.mxu0 %v2415_v61 }
 0x176   : >> { %1045 = vmatprep.subr.bf16.mxu0 %v2420_v62 }
 0x179   : >> { %1046 = vmatpush1.bf16.msra.mxu0 %v2430_v0 }
 0x17a   : >> { %1047 = vmatprep.subr.bf16.mxu0 %v2436_v1 }
 0x17d   : >> { %1048 = vmatpush1.bf16.msra.mxu0 %v2445_v3 }
 0x17e   : >> { %1049 = vmatprep.subr.bf16.mxu0 %v2451_v4 }
 0x181   : >> { %1050 = vmatpush1.bf16.msra.mxu0 %v2461_v6 }
 0x182   : >> { %1051 = vmatprep.subr.bf16.mxu0 %v2467_v7 }
 0x185   : >> { %1052 = vmatpush1.bf16.msra.mxu0 %v2477_v9 }
 0x186   : >> { %1311 = vmatprep.subr.bf16.mxu0 %v2367_v51  ;;  %v2026_v51 = vld [vmem:[%s2742_s1 + $0x68] ss:$12 sps:$4 sm:$0xff]  }
 0x187   : >> { %1870 = vmatpush3.bf16.msra.mxu1 %v2026_v51  ;;  %v1711_v51 = vld [vmem:[%s2553_s29 + $0x40] sm:$0xff] }
 0x188   : >> { %1871 = vmatprep.subr.bf16.mxu1 %v2152_v53 }
 0x18b   : >> { %1872 = vmatpush3.bf16.msra.mxu1 %v2027_v10 }
 0x18c   : >> { %1873 = vmatprep.subr.bf16.mxu1 %v2152_v53 }
 0x18f   : >> { %1874 = vmatpush3.bf16.msra.mxu1 %v2028_v11 }
 0x190   : >> { %1875 = vmatprep.subr.bf16.mxu1 %v2152_v53 }
 0x193   : >> { %1876 = vmatpush3.bf16.msra.mxu1 %v2029_v12 }
 0x194   : >> { %1877 = vmatprep.subr.bf16.mxu1 %v2152_v53 }
 0x197   : >> { %1878 = vmatpush3.bf16.msra.mxu1 %v2030_v13 }
 0x198   : >> { %1883 = vmatprep.subr.bf16.mxu1 %v2152_v53 }
 0x228   : >> { %v797_v15 = vpop.f32.mrf.mxu0  ;;  %v838_v16 = vpop.f32.mrf.mxu1 }
 0x229   : >> { %v844_v17 = vadd.f32 %v1675_v14, %v797_v15  ;;  %v858_v32 = vadd.f32 %v2352_v49, %v838_v16 }
 0x22a   : >> { %v799_v18 = vpop.f32.mrf.mxu0  ;;  %v1861_v19 = vpop.f32.mrf.mxu1 }
 0x22b   : >> { %v1702_v20 = vmul.f32 -1.442695, %v844_v17  ;;  %v845_v26 = vadd.f32 %v1676_v21, %v799_v18  ;;  %v1743_v19 = vld [vmem:[%s2553_s29 + $0x48] sm:$0xff] }
 0x22c   : >> { %v801_v22 = vpop.f32.mrf.mxu0  ;;  %v841_v23 = vpop.f32.mrf.mxu1 }
 0x22d   : >> { %2049 = vpow2.f32 %v1702_v20  ;;  %v1703_v27 = vmul.f32 -1.442695, %v845_v26  ;;  %v1744_v26 = vld [vmem:[%s2553_s29 + $0x50] sm:$0xff] }
 0x22e   : >> { %v802_v24 = vpop.f32.mrf.mxu0  ;;  %v1862_v25 = vpop.f32.mrf.mxu1 }
 0x22f   : >> { %2051 = vpow2.f32 %v1703_v27 }
 0x23a   : >> { %v2050_v28 = vpop.eup %2049 }
 0x23b   : >> { %v852_v29 = vadd.f32 1.0, %v2050_v28 }
 0x23c   : >> { %v2052_v30 = vpop.eup %2051 }
 0x23d   : >> { %2053 = vrcp.f32 %v852_v29  ;;  %v853_v31 = vadd.f32 1.0, %v2052_v30 }
 0x23f   : >> { %2055 = vrcp.f32 %v853_v31 }
 0x24a   : >> { %v2054_v33 = vpop.eup %2053 }
 0x24b   : >> { %v859_v35 = vmul.f32 %v2054_v33, %v858_v32 }
 0x24c   : >> { %v2056_v37 = vpop.eup %2055 }
 0x24d   : >> { %v860_v36 = vadd.f32 %v1677_v34, %v859_v35  ;;  %v862_v38 = vsub.f32 1.0, %v2056_v37  ;;  %v864_v41 = vmul.f32 %v2056_v37, %v2564_v63 }
 0x24f   : >> { %2057 = vtanh.f32 %v860_v36 }
 0x25c   : >> { %v2058_v39 = vpop.eup %2057 }
 0x25d   : >> { %v863_v40 = vmul.f32 %v2058_v39, %v862_v38  ;;  %v1745_v39 = vld [vmem:[%s2553_s29 + $0x58] sm:$0xff] }
 0x25f   : >> { %v2626_v42 = vadd.f32 %v864_v41, %v863_v40 }
 0x261   : >> { %1706 = vst [vmem:[%s2562_s4 + $0x8] sm:$0xff] %v2626_v42  ;;  %v876_v43 = vpack.c.bf16 %v2626_v42, %v2626_v42 }
 0x263   : >> { %1070 = vmatmul.mubr.bf16.vlgmr.msra.gmra.mxu0 %v876_v43  ;;  %1880 = vmatmul.mubr.bf16.vlgmr.msra.gmra.mxu1 %v876_v43 }
 0x264   : >> { %1312 = vmatpush1.bf16.msra.mxu0 %v2372_v52  ;;  %1343 = vmatprep.mubr.bf16.mxu0 %v2153_v54  ;;  %v2031_v52 = vld [vmem:[%s2742_s1 + $0xb0] ss:$12 sps:$4 sm:$0xff]   ;;  %v2032_v54 = vld [vmem:[%s2742_s1 + $0x98] ss:$12 sps:$4 sm:$0xff]  }
 0x265   : >> { %1313 = vmatprep.subr.bf16.mxu0 %v2380_v55  ;;  %1899 = vmatprep.mubr.msk.bf16.mxu1 %vm2154_vm0, %v2152_v53  ;;  %v2033_v55 = vld [vmem:[%s2742_s1 + $0x80] ss:$12 sps:$4 sm:$0xff]  }
 0x266   : >> { %1884 = vmatpush3.bf16.msra.mxu1 %v2031_v52 }
 0x267   : >> { %1885 = vmatprep.subr.bf16.mxu1 %v2152_v53 }
 0x268   : >> { %1314 = vmatpush1.bf16.msra.mxu0 %v2388_v56  ;;  %v2034_v56 = vld [vmem:[%s2742_s1 + $0x68] ss:$12 sps:$4 sm:$0xff]  }
 0x269   : >> { %1315 = vmatprep.subr.bf16.mxu0 %v2394_v57  ;;  %v2035_v57 = vld [vmem:[%s2742_s1 + $0x50] ss:$12 sps:$4 sm:$0xff]  }
 0x26a   : >> { %1886 = vmatpush3.bf16.msra.mxu1 %v2032_v54 }
 0x26b   : >> { %1887 = vmatprep.subr.bf16.mxu1 %v2152_v53 }
 0x26c   : >> { %1316 = vmatpush1.bf16.msra.mxu0 %v2400_v58  ;;  %v2036_v58 = vld [vmem:[%s2742_s1 + $0x38] ss:$12 sps:$4 sm:$0xff]  }
 0x26d   : >> { %1317 = vmatprep.subr.bf16.mxu0 %v2406_v59  ;;  %v2037_v59 = vld [vmem:[%s2742_s1 + $0x20] ss:$12 sps:$4 sm:$0xff]  }
 0x26e   : >> { %1888 = vmatpush3.bf16.msra.mxu1 %v2033_v55 }
 0x26f   : >> { %1889 = vmatprep.subr.bf16.mxu1 %v2152_v53 }
 0x270   : >> { %1318 = vmatpush1.bf16.msra.mxu0 %v2415_v61  ;;  %v2038_v61 = vld [vmem:[%s2742_s1 + $0x8] ss:$12 sps:$4 sm:$0xff]  }
 0x271   : >> { %1319 = vmatprep.subr.bf16.mxu0 %v2420_v62  ;;  %v1709_v62 = vld [vmem:[%s2553_s29 + $0x30] sm:$0xff] }
 0x272   : >> { %1890 = vmatpush3.bf16.msra.mxu1 %v2034_v56 }
 0x273   : >> { %1891 = vmatprep.subr.bf16.mxu1 %v2152_v53 }
 0x274   : >> { %1320 = vmatpush1.bf16.msra.mxu0 %v2430_v0 }
 0x275   : >> { %1321 = vmatprep.subr.bf16.mxu0 %v2436_v1 }
 0x276   : >> { %1892 = vmatpush3.bf16.msra.mxu1 %v2035_v57 }
 0x277   : >> { %1893 = vmatprep.subr.bf16.mxu1 %v2152_v53 }
 0x278   : >> { %1322 = vmatpush1.bf16.msra.mxu0 %v2445_v3 }
 0x279   : >> { %1323 = vmatprep.subr.bf16.mxu0 %v2451_v4 }
 0x27a   : >> { %1894 = vmatpush3.bf16.msra.mxu1 %v2036_v58 }
 0x27b   : >> { %1895 = vmatprep.subr.bf16.mxu1 %v2152_v53 }
 0x27c   : >> { %1324 = vmatpush1.bf16.msra.mxu0 %v2461_v6 }
 0x27d   : >> { %1325 = vmatprep.subr.bf16.mxu0 %v2467_v7 }
 0x27e   : >> { %1896 = vmatpush3.bf16.msra.mxu1 %v2037_v59 }
 0x27f   : >> { %1897 = vmatprep.subr.bf16.mxu1 %v2152_v53 }
 0x280   : >> { %1326 = vmatpush1.bf16.msra.mxu0 %v2477_v9  ;;  %v1710_v9 = vld [vmem:[%s2553_s29 + $0x38] sm:$0xff] }
 0x282   : >> { %1898 = vmatpush3.bf16.msra.mxu1 %v2038_v61 }
 0x323   : >> { %v1071_v0 = vpop.f32.mrf.mxu0  ;;  %v1112_v1 = vpop.f32.mrf.mxu1 }
 0x324   : >> { %v1118_v3 = vadd.f32 %v1709_v62, %v1071_v0  ;;  %v1132_v5 = vadd.f32 %v2352_v49, %v1112_v1 }
 0x325   : >> { %v1073_v4 = vpop.f32.mrf.mxu0  ;;  %v1881_v6 = vpop.f32.mrf.mxu1 }
 0x326   : >> { %v1736_v7 = vmul.f32 -1.442695, %v1118_v3  ;;  %v1119_v48 = vadd.f32 %v1710_v9, %v1073_v4 }
 0x327   : >> { %v1075_v44 = vpop.f32.mrf.mxu0  ;;  %v1115_v45 = vpop.f32.mrf.mxu1 }
 0x328   : >> { %2059 = vpow2.f32 %v1736_v7  ;;  %v1737_v60 = vmul.f32 -1.442695, %v1119_v48 }
 0x329   : >> { %v1076_v46 = vpop.f32.mrf.mxu0  ;;  %v1882_v47 = vpop.f32.mrf.mxu1 }
 0x32a   : >> { %2061 = vpow2.f32 %v1737_v60 }
 0x335   : >> { %v2060_v63 = vpop.eup %2059 }
 0x336   : >> { %v1126_v53 = vadd.f32 1.0, %v2060_v63 }
 0x337   : >> { %v2062_v2 = vpop.eup %2061 }
 0x338   : >> { %2063 = vrcp.f32 %v1126_v53  ;;  %v1127_v50 = vadd.f32 1.0, %v2062_v2 }
 0x33a   : >> { %2065 = vrcp.f32 %v1127_v50 }
 0x345   : >> { %v2064_v8 = vpop.eup %2063 }
 0x346   : >> { %v1133_v10 = vmul.f32 %v2064_v8, %v1132_v5 }
 0x347   : >> { %v2066_v12 = vpop.eup %2065 }
 0x348   : >> { %v1134_v11 = vadd.f32 %v1711_v51, %v1133_v10  ;;  %v1136_v13 = vsub.f32 1.0, %v2066_v12  ;;  %v1138_v16 = vmul.f32 %v2066_v12, %v2626_v42 }
 0x34a   : >> { %2067 = vtanh.f32 %v1134_v11 }
 0x357   : >> { %v2068_v14 = vpop.eup %2067 }
 0x358   : >> { %v1137_v15 = vmul.f32 %v2068_v14, %v1136_v13 }
 0x35a   : >> { %v1139_v17 = vadd.f32 %v1138_v16, %v1137_v15 }
 0x35c   : >> { %1740 = vst [vmem:[%s2562_s4 + $0x10] sm:$0xff] %v1139_v17  ;;  %v1150_v18 = vpack.c.bf16 %v1139_v17, %v1139_v17 }
 0x35e   : >> { %1344 = vmatmul.mubr.bf16.vlgmr.msra.gmra.mxu0 %v1150_v18  ;;  %1900 = vmatmul.mubr.bf16.vlgmr.msra.gmra.mxu1 %v1150_v18 }
 0x41e   : >> { %v1345_v20 = vpop.f32.mrf.mxu0  ;;  %v1386_v21 = vpop.f32.mrf.mxu1 }
 0x41f   : >> { %v1392_v22 = vadd.f32 %v1743_v19, %v1345_v20  ;;  %v1406_v37 = vadd.f32 %v2352_v49, %v1386_v21 }
 0x420   : >> { %v1347_v23 = vpop.f32.mrf.mxu0  ;;  %v1901_v24 = vpop.f32.mrf.mxu1 }
 0x421   : >> { %v1770_v25 = vmul.f32 -1.442695, %v1392_v22  ;;  %v1393_v31 = vadd.f32 %v1744_v26, %v1347_v23 }
 0x422   : >> { %v1349_v27 = vpop.f32.mrf.mxu0  ;;  %v1389_v28 = vpop.f32.mrf.mxu1 }
 0x423   : >> { %2069 = vpow2.f32 %v1770_v25  ;;  %v1771_v32 = vmul.f32 -1.442695, %v1393_v31 }
 0x424   : >> { %v1350_v29 = vpop.f32.mrf.mxu0  ;;  %v1902_v30 = vpop.f32.mrf.mxu1 }
 0x425   : >> { %2071 = vpow2.f32 %v1771_v32 }
 0x430   : >> { %v2070_v33 = vpop.eup %2069 }
 0x431   : >> { %v1400_v34 = vadd.f32 1.0, %v2070_v33 }
 0x432   : >> { %v2072_v35 = vpop.eup %2071 }
 0x433   : >> { %2073 = vrcp.f32 %v1400_v34  ;;  %v1401_v36 = vadd.f32 1.0, %v2072_v35 }
 0x435   : >> { %2075 = vrcp.f32 %v1401_v36 }
 0x440   : >> { %v2074_v38 = vpop.eup %2073 }
 0x441   : >> { %v1407_v40 = vmul.f32 %v2074_v38, %v1406_v37 }
 0x442   : >> { %v2076_v42 = vpop.eup %2075 }
 0x443   : >> { %v1408_v41 = vadd.f32 %v1745_v39, %v1407_v40  ;;  %v1410_v43 = vsub.f32 1.0, %v2076_v42  ;;  %v1412_v55 = vmul.f32 %v2076_v42, %v1139_v17 }
 0x445   : >> { %2077 = vtanh.f32 %v1408_v41 }
 0x452   : >> { %v2078_v52 = vpop.eup %2077 }
 0x453   : >> { %v1411_v54 = vmul.f32 %v2078_v52, %v1410_v43  ;;  %318 = sbr.rel (!%p316_p13) target bundleno = 75 (0x4b), region = 147 }
 0x455   : >> { %v1413_v56 = vadd.f32 %v1412_v55, %v1411_v54  }
 0x457   : >> { %1774 = vst [vmem:[%s2562_s4 + $0x18] sm:$0xff] %v1413_v56  ;;  %v2746_v50 = vmov %v1413_v56  ;;  %1417 = vst [vmem:[#allocation2] sm:$0xff] (%p316_p13), %v1413_v56 }
 0x458   : > { %1424 = sbr.rel (!%p2223_p6) target bundleno = 1129 (0x469), region = 70  ;;  %s1786_s12 = sshll.u32 (%p2223_p6), %s2125_s14, 5 }
 0x459   : > { %s1427_s23 = sadd.s32 (%p2223_p6), %s2129_s15, %s1786_s12 }
 0x45a   : > { %s1778_s21 = sshll.u32 (%p2223_p6), %s1427_s23, 3 }
 0x45b   : > { %s1429_s4 = scalar_lea.vmem (%p2223_p6), %s2744_s3, %s1778_s21 }
 0x45e   : > { %v1488_v57 = vld [vmem:[%s2346_s25] sm:$0xff]  ;;  %v1490_v49 = vld [vmem:[%s2346_s25 + $0x8] sm:$0xff]  ;;  %v1492_v58 = vld [vmem:[%s2346_s25 + $0x10] sm:$0xff] }
 0x45f   : > { %v1494_v59 = vld [vmem:[%s2346_s25 + $0x18] sm:$0xff]  ;;  %v1496_v61 = vld [vmem:[%s2346_s25 + $0x20] sm:$0xff]  ;;  %v1498_v62 = vld [vmem:[%s2346_s25 + $0x28] sm:$0xff]  ;;  %1489 = vst [vmem:[%s1429_s4] sm:$0xff] %v1488_v57 }
 0x460   : > { %v1500_v0 = vld [vmem:[%s2346_s25 + $0x30] sm:$0xff]  ;;  %v1502_v1 = vld [vmem:[%s2346_s25 + $0x38] sm:$0xff]  ;;  %v1504_v3 = vld [vmem:[%s2346_s25 + $0x40] sm:$0xff]  ;;  %1491 = vst [vmem:[%s1429_s4 + $0x10] sm:$0xff] %v1490_v49 }
 0x461   : > { %v1506_v4 = vld [vmem:[%s2346_s25 + $0x48] sm:$0xff]  ;;  %v1508_v6 = vld [vmem:[%s2346_s25 + $0x50] sm:$0xff]  ;;  %v1510_v7 = vld [vmem:[%s2346_s25 + $0x58] sm:$0xff]  ;;  %1493 = vst [vmem:[%s1429_s4 + $0x20] sm:$0xff] %v1492_v58 }
 0x462   : > { %1495 = vst [vmem:[%s1429_s4 + $0x30] sm:$0xff] %v1494_v59  ;;  %1497 = vst [vmem:[%s1429_s4 + $0x40] sm:$0xff] %v1496_v61  ;;  %v1512_v9 = vld [vmem:[%s2346_s25 + $0x60] sm:$0xff]  ;;  %v1514_v44 = vld [vmem:[%s2346_s25 + $0x68] sm:$0xff] }
 0x463   : > { %1499 = vst [vmem:[%s1429_s4 + $0x50] sm:$0xff] %v1498_v62  ;;  %1501 = vst [vmem:[%s1429_s4 + $0x60] sm:$0xff] %v1500_v0  ;;  %v1516_v45 = vld [vmem:[%s2346_s25 + $0x70] sm:$0xff]  ;;  %v1518_v46 = vld [vmem:[%s2346_s25 + $0x78] sm:$0xff] }
 0x464   : > { %1503 = vst [vmem:[%s1429_s4 + $0x70] sm:$0xff] %v1502_v1  ;;  %1505 = vst [vmem:[%s1429_s4 + $0x80] sm:$0xff] %v1504_v3 }
 0x465   : > { %1507 = vst [vmem:[%s1429_s4 + $0x90] sm:$0xff] %v1506_v4  ;;  %1509 = vst [vmem:[%s1429_s4 + $0xa0] sm:$0xff] %v1508_v6 }
 0x466   : > { %1511 = vst [vmem:[%s1429_s4 + $0xb0] sm:$0xff] %v1510_v7  ;;  %1513 = vst [vmem:[%s1429_s4 + $0xc0] sm:$0xff] %v1512_v9 }
 0x467   : > { %1515 = vst [vmem:[%s1429_s4 + $0xd0] sm:$0xff] %v1514_v44  ;;  %1517 = vst [vmem:[%s1429_s4 + $0xe0] sm:$0xff] %v1516_v45 }
 0x468   : > { %1519 = vst [vmem:[%s1429_s4 + $0xf0] sm:$0xff] %v1518_v46 }
 0x469 PF: > { %s13_s18 = sadd.s32 1, %s2141_s18   ;;  %s2747_s12 = smov %s2121_s13 }
 0x46a   : > { %p10_p0 = scmp.ge.s32.totalorder %s13_s18, 6   ;;  %s2748_s13 = smov %s2231_s27 }
 0x46b   : > { %s2749_s14 = smov %s2133_s16  ;;  %s2750_s15 = smov %s2137_s17 }
 0x46c   : > { %s2751_s16 = smov %s2754_s19  ;;  %s2752_s17 = smov %s2758_s20 }
 0x46d   :  { %12 = sbr.rel (!%p10_p0) target bundleno = 4 (0x4), region = 158 }

</bundles_post_ra>
